<compile_context>
chip_gen: v7x
topology: tpu7x:2x2x1
jax: 0.10.0
libtpu: 0.0.40
codegen_flags: <defaults>
</compile_context>

<pallas_src>
import functools

import jax
import jax.numpy as jnp
from jax.experimental import pallas as pl
from jax.experimental.pallas import tpu as pltpu

_LANE = 128
_EPS = 1e-5


def _risk_obj_loss_kernel(w_ref, pred_ref, tar_ref, partial_ref, *,
                          needs_mask, hard_targets):
    """One batch-chunk of the weighted-BCE sum, reduced to a lane-dense row.

    w_ref       : (2,)          SMEM   [w0, w1]
    pred_ref    : (TB, T, Np)   VMEM   predictions (native dtype, cast here)
    tar_ref     : (TB, 1, Np)   VMEM   targets (f32); padded entries are -1
    partial_ref : (1, 1, Np)    VMEM   per-chunk, per-lane partial sums (f32)
    """
    pred = pred_ref[...].astype(jnp.float32)     # (TB, T, Np)
    tar = tar_ref[...].astype(jnp.float32)       # (TB, 1, Np) -> broadcasts over T
    w0 = w_ref[0]
    w1 = w_ref[1]

    if hard_targets:
        # Targets are strictly {0,1}: one log per element instead of two
        # (halves the work on the single EUP slot).
        pos = tar > 0.5
        arg = jnp.where(pos, pred, 1.0 - pred) + _EPS
        term = jnp.where(pos, w1, w0) * jnp.log(arg)
    else:
        # General (soft-label-safe) two-term form, identical to the reference.
        term = (w1 * (tar * jnp.log(pred + _EPS))
                + w0 * ((1.0 - tar) * jnp.log(1.0 - pred + _EPS)))

    if needs_mask:
        # Padded lanes / padded batch rows carry a target sentinel of -1:
        # a single VPU compare+select zeroes them out (no iota needed).
        term = jnp.where(tar >= 0.0, term, 0.0)

    # Reduce the chunk but KEEP lanes: axis 0 is cheap across-vreg VPU adds,
    # axis 1 is one XLU sublane reduce per chunk (amortized over TB*T*Np work).
    s = jnp.sum(term, axis=0, keepdims=True)             # (1, T, Np)
    partial_ref[...] = jnp.sum(s, axis=1, keepdims=True)  # (1, 1, Np)


def risk_obj_loss_ref(outputs, targets, weights):
    """Pure-JAX reference matching the PyTorch loop semantics."""
    B = targets.shape[0]
    tar = targets[:, None, :].astype(jnp.float32)                       # (B, 1, N)
    pred = outputs.astype(jnp.float32)                                  # (B, T, N)
    term = (weights[1] * (tar * jnp.log(pred + _EPS))
            + weights[0] * ((1.0 - tar) * jnp.log(1.0 - pred + _EPS)))
    per_t = -jnp.mean(term, axis=-1)                                    # (B, T)
    return jnp.sum(per_t) / B


def risk_obj_loss(outputs, targets, weights, *,
                  hard_targets=False,
                  use_pallas=None,
                  target_tile_bytes=6 * 1024 * 1024):
    """outputs: (B, T, N) predictions in (0,1) (f32 or bf16); targets: (B, N); weights: (2,)."""
    B, T, N = outputs.shape
    weights = jnp.asarray(weights, jnp.float32).reshape(2)

    # Tiny inputs: pallas_call launch + pipeline prologue dominates; let XLA fuse.
    if use_pallas is None:
        use_pallas = outputs.size * jnp.dtype(outputs.dtype).itemsize >= (128 * 1024)
    if not use_pallas:
        return risk_obj_loss_ref(outputs, targets, weights)

    # --- lane padding (N -> multiple of 128) and batch chunking -------------
    n_pad = pl.cdiv(N, _LANE) * _LANE
    itemsize = jnp.dtype(outputs.dtype).itemsize
    bytes_per_batch_elem = T * n_pad * itemsize
    # TODO(synk): if a single (T, N) slice exceeds target_tile_bytes we still load
    # it whole; tile T as well for extremely long sequences.
    tb = max(1, min(B, target_tile_bytes // max(bytes_per_batch_elem, 1)))
    num_chunks = pl.cdiv(B, tb)
    b_pad = num_chunks * tb

    tar3 = targets.astype(jnp.float32).reshape(B, 1, N)
    pad_n = n_pad - N
    pad_b = b_pad - B
    needs_mask = bool(pad_n or pad_b)
    if needs_mask:
        # Padded predictions are 0 (logs stay finite); padded targets are -1
        # (sentinel used by the in-kernel validity mask).
        outputs = jnp.pad(outputs, ((0, pad_b), (0, 0), (0, pad_n)))
        tar3 = jnp.pad(tar3, ((0, pad_b), (0, 0), (0, pad_n)), constant_values=-1.0)

    tile_bytes = tb * T * n_pad * itemsize
    vmem_limit_bytes = int(max(32 * 1024 * 1024,
                               2 * tile_bytes + 2 * tb * n_pad * 4 + (4 << 20)))

    kernel = functools.partial(_risk_obj_loss_kernel,
                               needs_mask=needs_mask,
                               hard_targets=hard_targets)

    partials = pl.pallas_call(
        kernel,
        out_shape=jax.ShapeDtypeStruct((num_chunks, 1, n_pad), jnp.float32),
        grid_spec=pltpu.PrefetchScalarGridSpec(
            num_scalar_prefetch=0,
            grid=(num_chunks,),
            in_specs=[
                pl.BlockSpec(memory_space=pltpu.SMEM),                  # weights (2,)
                pl.BlockSpec((tb, T, n_pad), lambda c: (c, 0, 0)),      # outputs chunk
                pl.BlockSpec((tb, 1, n_pad), lambda c: (c, 0, 0)),      # targets chunk
            ],
            out_specs=pl.BlockSpec((1, 1, n_pad), lambda c: (c, 0, 0)),  # per-chunk partials
        ),
        compiler_params=pltpu.CompilerParams(
            dimension_semantics=("parallel",),       # no cross-step carry
            vmem_limit_bytes=vmem_limit_bytes,
        ),
    )(weights, outputs, tar3)

    # Epilogue: single reduce + fused (-1/(B*N)) scale (folds mean_N and /batch).
    return -jnp.sum(partials) / jnp.float32(B * N)


if __name__ == "__main__":
    key = jax.random.PRNGKey(0)
    kp, kt, kp2, kt2 = jax.random.split(key, 4)

    # Case 1: N not a multiple of 128 -> lane padding + sentinel mask,
    # hard-target single-log path, one chunk.
    B, T, N = 5, 8, 96
    outputs = jax.nn.sigmoid(jax.random.normal(kp, (B, T, N), dtype=jnp.float32))
    targets = (jax.random.uniform(kt, (B, N)) > 0.5).astype(jnp.float32)
    weights = jnp.array([0.3, 0.7], dtype=jnp.float32)

    loss1 = jax.block_until_ready(
        risk_obj_loss(outputs, targets, weights, hard_targets=True, use_pallas=True))
    ref1 = risk_obj_loss_ref(outputs, targets, weights)
    assert jnp.allclose(loss1, ref1, rtol=1e-4, atol=1e-5), (loss1, ref1)

    # Case 2: force tiny tiles -> multiple chunks + batch padding + general two-log path.
    loss2 = jax.block_until_ready(
        risk_obj_loss(outputs, targets, weights, hard_targets=False,
                      use_pallas=True, target_tile_bytes=2 * T * _LANE * 4))
    assert jnp.allclose(loss2, ref1, rtol=1e-4, atol=1e-5), (loss2, ref1)

    # Case 3: bf16 ingest (no wrapper-side cast), lane-exact N.
    B2, T2, N2 = 4, 8, 128
    outputs_bf16 = jax.nn.sigmoid(
        jax.random.normal(kp2, (B2, T2, N2), dtype=jnp.float32)).astype(jnp.bfloat16)
    targets2 = (jax.random.uniform(kt2, (B2, N2)) > 0.5).astype(jnp.float32)
    loss3 = jax.block_until_ready(
        risk_obj_loss(outputs_bf16, targets2, weights, hard_targets=True, use_pallas=True))
    ref3 = risk_obj_loss_ref(outputs_bf16, targets2, weights)
    assert jnp.allclose(loss3, ref3, rtol=1e-4, atol=1e-4), (loss3, ref3)

    print("KERNEL_OK")
</pallas_src>

<mosaic_0001>
module attributes {stable_mosaic.version = 11 : i64} {
  func.func @_risk_obj_loss_kernel(%arg0: i32, %arg1: memref<2xf32, #tpu.memory_space<smem>>, %arg2: memref<5x8x128xf32, #tpu.memory_space<vmem>>, %arg3: memref<5x1x128xf32, #tpu.memory_space<vmem>>, %arg4: memref<1x1x128xf32, #tpu.memory_space<vmem>>) attributes {dimension_semantics = [#tpu.dimension_semantics<parallel>], iteration_bounds = array<i64: 1>, scalar_prefetch = 0 : i64, scratch_operands = 0 : i64, tpu.core_type = #tpu.core_type<tc>, window_params = [{transform_indices = @transform_0, window_bounds = array<i64: 2>}, {transform_indices = @transform_1, window_bounds = array<i64: 5, 8, 128>}, {transform_indices = @transform_2, window_bounds = array<i64: 5, 1, 128>}, {transform_indices = @transform_3, window_bounds = array<i64: 1, 1, 128>}]} {
    %c0 = arith.constant 0 : index
    %c0_0 = arith.constant 0 : index
    %c0_1 = arith.constant 0 : index
    %0 = vector.load %arg2[%c0, %c0_0, %c0_1] : memref<5x8x128xf32, #tpu.memory_space<vmem>>, vector<5x8x128xf32>
    %c0_2 = arith.constant 0 : index
    %c0_3 = arith.constant 0 : index
    %c0_4 = arith.constant 0 : index
    %1 = vector.load %arg3[%c0_2, %c0_3, %c0_4] : memref<5x1x128xf32, #tpu.memory_space<vmem>>, vector<5x1x128xf32>
    %c0_5 = arith.constant 0 : index
    %2 = memref.load %arg1[%c0_5] : memref<2xf32, #tpu.memory_space<smem>>
    %c1 = arith.constant 1 : index
    %3 = memref.load %arg1[%c1] : memref<2xf32, #tpu.memory_space<smem>>
    %cst = arith.constant 5.000000e-01 : f32
    %4 = vector.broadcast %cst : f32 to vector<5x1x128xf32>
    %5 = arith.cmpf ogt, %1, %4 : vector<5x1x128xf32>
    %cst_6 = arith.constant 1.000000e+00 : f32
    %6 = vector.broadcast %cst_6 : f32 to vector<5x8x128xf32>
    %7 = arith.subf %6, %0 : vector<5x8x128xf32>
    %8 = vector.shape_cast %5 : vector<5x1x128xi1> to vector<5x1x128xi1>
    %9 = vector.broadcast %8 : vector<5x1x128xi1> to vector<5x8x128xi1>
    %10 = arith.select %9, %0, %7 : vector<5x8x128xi1>, vector<5x8x128xf32>
    %cst_7 = arith.constant 9.99999974E-6 : f32
    %11 = vector.broadcast %cst_7 : f32 to vector<5x8x128xf32>
    %12 = arith.addf %10, %11 : vector<5x8x128xf32>
    %13 = vector.broadcast %3 : f32 to vector<5x1x128xf32>
    %14 = vector.broadcast %2 : f32 to vector<5x1x128xf32>
    %15 = arith.select %5, %13, %14 : vector<5x1x128xi1>, vector<5x1x128xf32>
    %16 = math.log %12 : vector<5x8x128xf32>
    %17 = vector.broadcast %15 : vector<5x1x128xf32> to vector<5x8x128xf32>
    %18 = arith.mulf %17, %16 : vector<5x8x128xf32>
    %cst_8 = arith.constant 0.000000e+00 : f32
    %19 = vector.broadcast %cst_8 : f32 to vector<5x1x128xf32>
    %20 = arith.cmpf oge, %1, %19 : vector<5x1x128xf32>
    %cst_9 = arith.constant 0.000000e+00 : f32
    %21 = vector.shape_cast %20 : vector<5x1x128xi1> to vector<5x1x128xi1>
    %22 = vector.broadcast %21 : vector<5x1x128xi1> to vector<5x8x128xi1>
    %23 = vector.broadcast %cst_9 : f32 to vector<5x8x128xf32>
    %24 = arith.select %22, %18, %23 : vector<5x8x128xi1>, vector<5x8x128xf32>
    %cst_10 = arith.constant dense<0.000000e+00> : vector<8x128xf32>
    %25 = vector.multi_reduction <add>, %24, %cst_10 [0] : vector<5x8x128xf32> to vector<8x128xf32>
    %26 = vector.shape_cast %25 : vector<8x128xf32> to vector<1x8x128xf32>
    %cst_11 = arith.constant dense<0.000000e+00> : vector<1x128xf32>
    %27 = vector.multi_reduction <add>, %26, %cst_11 [1] : vector<1x8x128xf32> to vector<1x128xf32>
    %28 = vector.shape_cast %27 : vector<1x128xf32> to vector<1x1x128xf32>
    %c0_12 = arith.constant 0 : index
    %c0_13 = arith.constant 0 : index
    %c0_14 = arith.constant 0 : index
    %29 = vector.load %arg4[%c0_12, %c0_13, %c0_14] : memref<1x1x128xf32, #tpu.memory_space<vmem>>, vector<1x1x128xf32>
    tpu.vector_store %arg4[%c0_12, %c0_13, %c0_14], %28 {strides = array<i32>} : memref<1x1x128xf32, #tpu.memory_space<vmem>>, vector<1x1x128xf32>,
    return
  }
  func.func @transform_0(%arg0: i32) -> i32 {
    %c0_i32 = arith.constant 0 : i32
    %c0_i32_0 = arith.constant 0 : i32
    return %c0_i32 : i32
  }
  func.func @transform_1(%arg0: i32) -> (i32, i32, i32) {
    %c0_i32 = arith.constant 0 : i32
    %c0_i32_0 = arith.constant 0 : i32
    %c0_i32_1 = arith.constant 0 : i32
    return %arg0, %c0_i32, %c0_i32_0 : i32, i32, i32
  }
  func.func @transform_2(%arg0: i32) -> (i32, i32, i32) {
    %c0_i32 = arith.constant 0 : i32
    %c0_i32_0 = arith.constant 0 : i32
    %c0_i32_1 = arith.constant 0 : i32
    return %arg0, %c0_i32, %c0_i32_0 : i32, i32, i32
  }
  func.func @transform_3(%arg0: i32) -> (i32, i32, i32) {
    %c0_i32 = arith.constant 0 : i32
    %c0_i32_0 = arith.constant 0 : i32
    %c0_i32_1 = arith.constant 0 : i32
    return %arg0, %c0_i32, %c0_i32_0 : i32, i32, i32
  }
}

</mosaic_0001>

<bundles_post_ra>
// kernel: tpu_custom_call.1
= control target key start
LH: loop header
LB: loop body
LE: loop exit
PB: predicated region body
PF: predicated region fallthrough
CT: control target
= control target key end

     0   :  { %8 = vsyncpa [#allocation5], 0  ;;  %s438_s0 = inlined_call_operand.hbm [shape: f32[2], index: 0, kind: input, shape index: {}]   ;;  %s439_s1 = inlined_call_operand.hbm [shape: f32[5,8,128], index: 1, kind: input, shape index: {}]   ;;  %s440_s2 = inlined_call_operand.vmem [shape: f32[5,1,128], index: 2, kind: input, shape index: {}]   ;;  %s441_s3 = inlined_call_operand.hbm [shape: f32[1,1,128], index: 3, kind: output, shape index: {}]  }
   0x1   :  { %9 = vsyncpa [#allocation3], 0 }
   0x2   :  { %10 = vsyncpa [#allocation4], 0  ;;  %s238_s14 = scalar_lea.hbm %s438_s0, 16 }
   0x3   :  { %p239_p0 = scmp.ne.s32.totalorder %s438_s0, %s238_s14  ;;  %p242_p1 = scmp.lt.u32.totalorder %s238_s14, %s438_s0 }
   0x5   :  { %p244_p2 = pnand %p242_p1, %p239_p0 }
   0x7   :  { %247 = shalt.err (!%p244_p2)
}
   0x8   :  { %s298_s19 = smov [#allocation2]   ;;  %s299_s22 = smov [#allocation6]  }
   0x9   :  { %18 = dma.hbm_to_smem %s438_s0, 16, %s298_s19, [#allocation5]  }
   0xa   :  { %s24_s23 = sshll.u32 %s299_s22, 4  ;;  %s248_s26 = scalar_lea.hbm %s439_s1, 640  ;;  %s25_s23 = int_to_ptr.vmem [resolvable:$true] %s24_s23 }
   0xb   :  { %p249_p3 = scmp.ne.s32.totalorder %s439_s1, %s248_s26  ;;  %p252_p4 = scmp.lt.u32.totalorder %s248_s26, %s439_s1 }
   0xd   :  { %p254_p5 = pnand %p252_p4, %p249_p3 }
   0xf   :  { %257 = shalt.err (!%p254_p5)
}
  0x10   :  { %s258_s4 = scalar_lea.vmem %s25_s23, 640  ;;  %p263_p7 = scmp.lt.s32.totalorder %s25_s23, %s25_s23 }
  0x11   :  { %p259_p6 = scmp.ne.s32.totalorder %s25_s23, %s258_s4  ;;  %p264_p8 = scmp.lt.s32.totalorder %s258_s4, %s258_s4 }
  0x13   :  { %p265_p9 = por %p264_p8, %p263_p7 }
  0x15   :  { %p266_p10 = pnand %p265_p9, %p259_p6 }
  0x17   :  { %269 = shalt.err (!%p266_p10)
}
  0x18   :  { %s300_s0 = smov 128   ;;  %s301_s5 = smov 8  }
  0x19   :  { %30 = dma.hbm_to_vmem [thread:$0]  %s439_s1, 640, %s25_s23, [#allocation3], %s300_s0, %s300_s0, %s301_s5  }
  0x1a   :  { %292 = dma.done.wait [#allocation5], 16  }
  0x1b   :  { %293 = vsyncadd [#allocation5], 4294967280 }
  0x1c   :  { %294 = dma.done.wait [#allocation3], 640  }
  0x1d   :  { %295 = vsyncadd [#allocation3], 4294966656 }
  0x1e   :  { %39 = sfence }
  0x1f   :  { %v351_v0 = vld [vmem:[%s440_s2] sm:$0x1]  ;;  %v356_v1 = vld [vmem:[%s440_s2 + $0x1] sm:$0x1]  ;;  %v361_v2 = vld [vmem:[%s440_s2 + $0x2] sm:$0x1]  ;;  %v67_v4 = vlaneseq }
  0x20   :  { %v366_v3 = vld [vmem:[%s440_s2 + $0x3] sm:$0x1]  ;;  %v371_v5 = vld [vmem:[%s440_s2 + $0x4] sm:$0x1]  ;;  %vm52_vm0 = vcmp.gt.f32.partialorder %v351_v0, 0.5  ;;  %vm53_vm1 = vcmp.gt.f32.partialorder %v356_v1, 0.5 }
  0x21   :  { %vm54_vm2 = vcmp.gt.f32.partialorder %v361_v2, 0.5  ;;  %vm55_vm3 = vcmp.gt.f32.partialorder %v366_v3, 0.5  ;;  %v40_v6 = vld [vmem:[#allocation6] sm:$0xff]  ;;  %v41_v7 = vld [vmem:[#allocation6 + $0x8] sm:$0xff]  ;;  %vm56_vm4 = vcmp.gt.f32.partialorder %v371_v5, 0.5  ;;  %v42_v8 = vld [vmem:[#allocation6 + $0x10] sm:$0xff] }
  0x22   :  { %v43_v9 = vld [vmem:[#allocation6 + $0x18] sm:$0xff]  ;;  %v44_v10 = vld [vmem:[#allocation6 + $0x20] sm:$0xff]  ;;  %v68_v11 = vshrl.u32 %v67_v4, 7  ;;  %v302_v12 = vmov 0   ;;  %v57_v17 = vsub.f32 1.0, %v40_v6  ;;  %v58_v20 = vsub.f32 1.0, %v41_v7 }
  0x23   :  { %v62_v13 = vsel %vm52_vm0, 1, %v302_v12  ;;  %v63_v14 = vsel %vm53_vm1, 1, %v302_v12  ;;  %v64_v15 = vsel %vm54_vm2, 1, %v302_v12  ;;  %v65_v16 = vsel %vm55_vm3, 1, %v302_v12  ;;  %s50_s2 = sld [smem:[#allocation2]]  ;;  %s221_s17 = sld [smem:[#allocation2 + $0x1]] }
  0x24   :  { %v66_v18 = vsel %vm56_vm4, 1, %v302_v12  ;;  %v388_v19 = vsub.s32 0, %v68_v11  ;;  %v59_v21 = vsub.f32 1.0, %v42_v8  ;;  %v60_v22 = vsub.f32 1.0, %v43_v9  ;;  %s303_s18 = smov [#allocation7]  }
  0x25   :  { %v61_v23 = vsub.f32 1.0, %v44_v10  ;;  %vm154_vm10 = vcmp.ge.f32.partialorder %v351_v0, 0.0  ;;  %vm155_vm11 = vcmp.ge.f32.partialorder %v356_v1, 0.0  ;;  %vm156_vm12 = vcmp.ge.f32.partialorder %v361_v2, 0.0  ;;  %s211_s19 = sshll.u32 %s303_s18, 4  ;;  %s212_s19 = int_to_ptr.vmem [resolvable:$true] %s211_s19 }
  0x26   :  { %v70_v24 = vrot.slane %v62_v13, %v388_v19  ;;  %v74_v25 = vrot.slane %v63_v14, %v388_v19  ;;  %v78_v26 = vrot.slane %v64_v15, %v388_v19  ;;  %v82_v27 = vrot.slane %v65_v16, %v388_v19  ;;  %s270_s20 = scalar_lea.vmem %s212_s19, 16  ;;  %s274_s21 = scalar_lea.vmem %s212_s19, 32 }
  0x27   :  { %v86_v28 = vrot.slane %v66_v18, %v388_v19  ;;  %vm157_vm13 = vcmp.ge.f32.partialorder %v366_v3, 0.0  ;;  %v159_v41 = vsel %vm154_vm10, 1, %v302_v12  ;;  %v160_v43 = vsel %vm155_vm11, 1, %v302_v12  ;;  %p271_p11 = scmp.ne.s32.totalorder %s212_s19, %s270_s20  ;;  %p275_p12 = scmp.lt.s32.totalorder %s212_s19, %s212_s19 }
  0x28   :  { %vm87_vm5 = vcmp.eq.s32.totalorder %v70_v24, 1  ;;  %vm88_vm6 = vcmp.eq.s32.totalorder %v74_v25, 1  ;;  %vm89_vm7 = vcmp.eq.s32.totalorder %v78_v26, 1  ;;  %vm90_vm8 = vcmp.eq.s32.totalorder %v82_v27, 1  ;;  %p276_p13 = scmp.lt.s32.totalorder %s274_s21, %s270_s20 }
  0x29   :  { %vm91_vm9 = vcmp.eq.s32.totalorder %v86_v28, 1  ;;  %v92_v29 = vsel %vm87_vm5, %v40_v6, %v57_v17  ;;  %v93_v30 = vsel %vm88_vm6, %v41_v7, %v58_v20  ;;  %v94_v31 = vsel %vm89_vm7, %v42_v8, %v59_v21 }
  0x2a   :  { %v95_v32 = vsel %vm90_vm8, %v43_v9, %v60_v22  ;;  %v96_v33 = vsel %vm91_vm9, %v44_v10, %v61_v23  ;;  %v97_v34 = vadd.f32 1e-05, %v92_v29  ;;  %v98_v35 = vadd.f32 1e-05, %v93_v30  ;;  %p277_p0 = por %p276_p13, %p275_p12 }
  0x2b   :  { %v99_v36 = vadd.f32 1e-05, %v94_v31  ;;  %v100_v37 = vadd.f32 1e-05, %v95_v32  ;;  %v101_v38 = vadd.f32 1e-05, %v96_v33  ;;  %v102_v39 = vstv %s221_s17 }
  0x2c   :  { %228 = vlog2.f32 %v97_v34  ;;  %v103_v40 = vstv %s50_s2  ;;  %vm158_vm14 = vcmp.ge.f32.partialorder %v371_v5, 0.0  ;;  %v161_v45 = vsel %vm156_vm12, 1, %v302_v12  ;;  %p278_p1 = pnand %p277_p0, %p271_p11 }
  0x2d   :  { %230 = vlog2.f32 %v98_v35  ;;  %v104_v42 = vsel %vm52_vm0, %v102_v39, %v103_v40  ;;  %v105_v44 = vsel %vm53_vm1, %v102_v39, %v103_v40  ;;  %v106_v46 = vsel %vm54_vm2, %v102_v39, %v103_v40 }
  0x2e   :  { %232 = vlog2.f32 %v99_v36  ;;  %v162_v47 = vsel %vm157_vm13, 1, %v302_v12  ;;  %v167_v48 = vrot.slane %v159_v41, %v388_v19  ;;  %v107_v49 = vsel %vm55_vm3, %v102_v39, %v103_v40 }
  0x2f   :  { %234 = vlog2.f32 %v100_v37  ;;  %v108_v50 = vsel %vm56_vm4, %v102_v39, %v103_v40  ;;  %v127_v51 = vrot.slane %v104_v42, %v388_v19  ;;  %v171_v52 = vrot.slane %v160_v43, %v388_v19 }
  0x30   :  { %236 = vlog2.f32 %v101_v38  ;;  %v131_v54 = vrot.slane %v105_v44, %v388_v19  ;;  %v163_v55 = vsel %vm158_vm14, 1, %v302_v12  ;;  %v175_v56 = vrot.slane %v161_v45, %v388_v19 }
  0x31   :  { %v135_v59 = vrot.slane %v106_v46, %v388_v19  ;;  %v179_v60 = vrot.slane %v162_v47, %v388_v19  ;;  %v139_v63 = vrot.slane %v107_v49, %v388_v19  ;;  %v143_v0 = vrot.slane %v108_v50, %v388_v19 }
  0x32   :  { %vm419_vm15 = vcmp.eq.s32.totalorder %v167_v48, 1  ;;  %v183_v5 = vrot.slane %v163_v55, %v388_v19  ;;  %vm185_vm0 = vcmp.eq.s32.totalorder %v171_v52, 1  ;;  %vm186_vm1 = vcmp.eq.s32.totalorder %v175_v56, 1 }
  0x33   :  { %vm187_vm2 = vcmp.eq.s32.totalorder %v179_v60, 1 }
  0x34   :  { %vm188_vm3 = vcmp.eq.s32.totalorder %v183_v5, 1 }
  0x36   :  { %v229_v53 = vpop.eup %228 }
  0x37   :  { %v231_v57 = vpop.eup %230  ;;  %v110_v58 = vmul.f32 0.6931472, %v229_v53 }
  0x38   :  { %v233_v61 = vpop.eup %232  ;;  %v112_v62 = vmul.f32 0.6931472, %v231_v57 }
  0x39   :  { %v235_v2 = vpop.eup %234  ;;  %v114_v3 = vmul.f32 0.6931472, %v233_v61  ;;  %v149_v4 = vmul.f32 %v127_v51, %v110_v58 }
  0x3a   :  { %v237_v6 = vpop.eup %236  ;;  %v116_v7 = vmul.f32 0.6931472, %v235_v2  ;;  %v150_v8 = vmul.f32 %v131_v54, %v112_v62 }
  0x3b   :  { %v118_v9 = vmul.f32 0.6931472, %v237_v6  ;;  %v151_v10 = vmul.f32 %v135_v59, %v114_v3  ;;  %v189_v11 = vsel %vm419_vm15, %v149_v4, 0.0 }
  0x3c   :  { %v152_v12 = vmul.f32 %v139_v63, %v116_v7  ;;  %v190_v13 = vsel %vm185_vm0, %v150_v8, 0.0 }
  0x3d   :  { %v153_v14 = vmul.f32 %v143_v0, %v118_v9  ;;  %v191_v15 = vsel %vm186_vm1, %v151_v10, 0.0  ;;  %v194_v16 = vadd.f32 %v190_v13, %v189_v11 }
  0x3e   :  { %v192_v17 = vsel %vm187_vm2, %v152_v12, 0.0 }
  0x3f   :  { %v195_v18 = vadd.f32 %v194_v16, %v191_v15  ;;  %v193_v19 = vsel %vm188_vm3, %v153_v14, 0.0 }
  0x41   :  { %v196_v20 = vadd.f32 %v195_v18, %v192_v17 }
  0x43   :  { %v197_v21 = vadd.f32 %v196_v20, %v193_v19 }
  0x45   :  { %v198_v22 = vrot.slane %v197_v21, 4 }
  0x47   :  { %v199_v23 = vadd.f32 %v198_v22, %v197_v21 }
  0x49   :  { %v200_v24 = vrot.slane %v199_v23, 2 }
  0x4b   :  { %v201_v25 = vadd.f32 %v200_v24, %v199_v23 }
  0x4d   :  { %v202_v26 = vrot.slane %v201_v25, 1 }
  0x4f   :  { %v203_v27 = vadd.f32 %v202_v26, %v201_v25 }
  0x51   :  { %204 = vst [vmem:[#allocation7] sm:$0x1] %v203_v27 }
  0x52   :  { %281 = shalt.err (!%p278_p1)
}
  0x53   :  { %s282_s24 = scalar_lea.hbm %s441_s3, 16 }
  0x54   :  { %p283_p2 = scmp.ne.s32.totalorder %s441_s3, %s282_s24  ;;  %p286_p3 = scmp.lt.u32.totalorder %s282_s24, %s441_s3 }
  0x56   :  { %p288_p4 = pnand %p286_p3, %p283_p2 }
  0x58   :  { %291 = shalt.err (!%p288_p4)
}
  0x59   :  { %214 = dma.vmem_to_hbm [thread:$0]  %s212_s19, 16, %s441_s3, [#allocation4]  }
  0x5a   :  { %296 = dma.done.wait [#allocation4], 16  }
  0x5b   :  { %297 = vsyncadd [#allocation4], 4294967280 }
  0x5c   :  { %218 = vsyncpa [#allocation3], 1 }
  0x5d   :  { %219 = vsyncpa [#allocation4], 1 }
  0x5e   :  { %220 = vsyncpa [#allocation5], 1 }

</bundles_post_ra>
